<compile_context>
chip_gen: v5e
topology: v5e:2x2
jax: 0.10.0
libtpu: 0.0.40
codegen_flags: <defaults>
</compile_context>

<pallas_src>
import numpy as np
import jax
import jax.numpy as jnp
from jax.experimental import pallas as pl
from jax.experimental.pallas import tpu as pltpu


_BINOMIAL = {
    1: [1.0],
    2: [1.0, 1.0],
    3: [1.0, 2.0, 1.0],
    4: [1.0, 3.0, 3.0, 1.0],
    5: [1.0, 4.0, 6.0, 4.0, 1.0],
    6: [1.0, 5.0, 10.0, 10.0, 5.0, 1.0],
    7: [1.0, 6.0, 15.0, 20.0, 15.0, 6.0, 1.0],
}


def _taps_1d(filt_size):
    # outer(t, t) == filt / filt.sum()  -> same normalization as the PyTorch module
    a = np.asarray(_BINOMIAL[filt_size], dtype=np.float64)
    return [float(v) for v in (a / a.sum())]


def _make_blur_kernel(filt_size, stride, Ho, Wo, taps):
    taps = [float(t) for t in taps]

    def w_idx(q):
        # taps q, q+stride, ..., q+stride*(Wo-1) along the sublane (W) axis
        return pl.ds(q, Wo) if stride == 1 else pl.ds(q, Wo, stride=stride)

    def kernel(x_ref, o_ref, hrow_ref):
        # x_ref:    (Hp, Wp, tbc)  padded input block, channels on lanes
        # o_ref:    (Ho, Wo, tbc)  output block
        # hrow_ref: (Wp, tbc) f32  scratch for one separable H-pass row
        def row_body(ho, carry):
            h0 = ho * stride
            # --- separable pass along H (outer axis, unit-stride row loads) ---
            acc = taps[0] * x_ref[h0].astype(jnp.float32)
            for p in range(1, filt_size):
                acc = acc + taps[p] * x_ref[h0 + p].astype(jnp.float32)
            hrow_ref[...] = acc
            # --- separable pass along W (sublane axis, strided tap loads) ---
            row = taps[0] * hrow_ref[w_idx(0), :]
            for q in range(1, filt_size):
                row = row + taps[q] * hrow_ref[w_idx(q), :]
            o_ref[ho] = row.astype(o_ref.dtype)
            return carry

        jax.lax.fori_loop(0, Ho, row_body, 0)

    return kernel


def _choose_bc_tiling(BC, hp, wp, ho, wo, itemsize):
    """Pick the lane tile over B*C and how far to zero-pad B*C to make it legal."""
    if BC <= 128:
        return BC, BC                          # one small full-extent lane block
    per_c = 2 * (hp * wp + ho * wo) * itemsize  # double-buffered in + out, per lane
    budget = 20 * 1024 * 1024                  # stays well inside v7x's 64 MiB VMEM
    max_t = max(128, min((budget // per_c) // 128 * 128, 1024))
    BCp = ((BC + 127) // 128) * 128            # make a multiple-of-128 tile divide it
    tbc = 128
    for cand in range(int(max_t), 127, -128):
        if BCp % cand == 0:
            tbc = cand
            break
    return tbc, BCp


def blurpool(x, channels, pad_type="reflect", filt_size=4, stride=2, pad_off=0):
    """Forward pass of BlurPool.  x: (B, C, H, W), NCHW (PyTorch convention)."""
    B, C, H, W = x.shape
    assert C == channels

    pad_l = int((filt_size - 1) / 2) + pad_off
    pad_r = int(np.ceil((filt_size - 1) / 2.0)) + pad_off
    mode = {"reflect": "reflect", "refl": "reflect",
            "replicate": "edge", "repl": "edge", "zero": "constant"}[pad_type]

    if filt_size == 1:
        # Pure strided subsampling, no arithmetic — plain JAX slicing.
        if pad_off == 0:
            return x[:, :, ::stride, ::stride]
        xp = jnp.pad(x, ((0, 0), (0, 0), (pad_l, pad_r), (pad_l, pad_r)), mode=mode)
        return xp[:, :, ::stride, ::stride]

    BC = B * C
    # Layout plumbing (single relayout pass): NCHW -> (H, W, B*C) so channels sit
    # on the lane axis, then spatial reflect/edge/zero padding.
    xt = jnp.transpose(x, (2, 3, 0, 1)).reshape(H, W, BC)
    xp = jnp.pad(xt, ((pad_l, pad_r), (pad_l, pad_r), (0, 0)), mode=mode)
    Hp, Wp = int(xp.shape[0]), int(xp.shape[1])
    Ho = (Hp - filt_size) // stride + 1
    Wo = (Wp - filt_size) // stride + 1

    tbc, BCp = _choose_bc_tiling(BC, Hp, Wp, Ho, Wo, x.dtype.itemsize)
    if BCp != BC:
        xp = jnp.pad(xp, ((0, 0), (0, 0), (0, BCp - BC)))

    kernel = _make_blur_kernel(filt_size, stride, Ho, Wo, _taps_1d(filt_size))

    out = pl.pallas_call(
        kernel,
        out_shape=jax.ShapeDtypeStruct((Ho, Wo, BCp), x.dtype),
        grid=(BCp // tbc,),
        in_specs=[pl.BlockSpec((Hp, Wp, tbc), lambda i: (0, 0, i))],
        out_specs=pl.BlockSpec((Ho, Wo, tbc), lambda i: (0, 0, i)),
        scratch_shapes=[pltpu.VMEM((Wp, tbc), jnp.float32)],
        compiler_params=pltpu.CompilerParams(
            dimension_semantics=("parallel",),
            vmem_limit_bytes=48 * 1024 * 1024,
        ),
    )(xp)

    if BCp != BC:
        out = out[:, :, :BC]
    # back to NCHW
    return jnp.transpose(out.reshape(Ho, Wo, B, C), (2, 3, 0, 1))


def _reference_blurpool(x, channels, pad_type="reflect", filt_size=4, stride=2,
                        pad_off=0):
    """Plain-JAX elementwise reference (no MXU conv -> exact f32 comparison)."""
    B, C, H, W = x.shape
    pad_l = int((filt_size - 1) / 2) + pad_off
    pad_r = int(np.ceil((filt_size - 1) / 2.0)) + pad_off
    mode = {"reflect": "reflect", "refl": "reflect",
            "replicate": "edge", "repl": "edge", "zero": "constant"}[pad_type]
    xp = jnp.pad(x, ((0, 0), (0, 0), (pad_l, pad_r), (pad_l, pad_r)), mode=mode)
    Hp, Wp = xp.shape[2], xp.shape[3]
    Ho = (Hp - filt_size) // stride + 1
    Wo = (Wp - filt_size) // stride + 1
    a = np.asarray(_BINOMIAL[filt_size], dtype=np.float64)
    f = a[:, None] * a[None, :]
    f = f / f.sum()
    out = jnp.zeros((B, C, Ho, Wo), jnp.float32)
    for p in range(filt_size):
        for q in range(filt_size):
            tile = xp[:, :,
                      p: p + stride * (Ho - 1) + 1: stride,
                      q: q + stride * (Wo - 1) + 1: stride].astype(jnp.float32)
            out = out + float(f[p, q]) * tile
    return out.astype(x.dtype)


if __name__ == "__main__":
    key = jax.random.PRNGKey(0)
    B, C, H, W = 2, 4, 16, 16
    x = jax.random.normal(key, (B, C, H, W), dtype=jnp.float32)

    y = blurpool(x, channels=C, pad_type="reflect", filt_size=4, stride=2, pad_off=0)
    y = jax.block_until_ready(y)

    ref = jax.block_until_ready(_reference_blurpool(x, channels=C))

    assert y.shape == (B, C, 8, 8), y.shape
    np.testing.assert_allclose(np.asarray(y), np.asarray(ref), rtol=1e-5, atol=1e-5)
    print("KERNEL_OK")
</pallas_src>

<mosaic_0001>
module attributes {stable_mosaic.version = 11 : i64} {
  func.func @kernel(%arg0: i32, %arg1: memref<19x19x8xf32, #tpu.memory_space<vmem>>, %arg2: memref<8x8x8xf32, #tpu.memory_space<vmem>>, %arg3: memref<19x8xf32, #tpu.memory_space<vmem>>) attributes {dimension_semantics = [#tpu.dimension_semantics<parallel>], iteration_bounds = array<i64: 1>, scalar_prefetch = 0 : i64, scratch_operands = 1 : i64, tpu.core_type = #tpu.core_type<tc>, window_params = [{transform_indices = @transform_0, window_bounds = array<i64: 19, 19, 8>}, {transform_indices = @transform_1, window_bounds = array<i64: 8, 8, 8>}]} {
    %c0_i32 = arith.constant 0 : i32
    %c8_i32 = arith.constant 8 : i32
    %0 = arith.addi %c0_i32, %c8_i32 : i32
    %c1_i32 = arith.constant 1 : i32
    scf.for %arg4 = %c0_i32 to %0 step %c1_i32  : i32 {
      %c2_i32 = arith.constant 2 : i32
      %1 = arith.muli %arg4, %c2_i32 : i32
      %2 = arith.index_cast %1 : i32 to index
      %c0 = arith.constant 0 : index
      %c0_1 = arith.constant 0 : index
      %3 = vector.load %arg1[%2, %c0, %c0_1] : memref<19x19x8xf32, #tpu.memory_space<vmem>>, vector<1x19x8xf32>
      %4 = vector.shape_cast %3 : vector<1x19x8xf32> to vector<19x8xf32>
      %cst = arith.constant 1.250000e-01 : f32
      %5 = vector.broadcast %cst : f32 to vector<19x8xf32>
      %6 = arith.mulf %5, %4 : vector<19x8xf32>
      %c1_i32_2 = arith.constant 1 : i32
      %7 = arith.addi %1, %c1_i32_2 : i32
      %8 = arith.index_cast %7 : i32 to index
      %c0_3 = arith.constant 0 : index
      %c0_4 = arith.constant 0 : index
      %9 = vector.load %arg1[%8, %c0_3, %c0_4] : memref<19x19x8xf32, #tpu.memory_space<vmem>>, vector<1x19x8xf32>
      %10 = vector.shape_cast %9 : vector<1x19x8xf32> to vector<19x8xf32>
      %cst_5 = arith.constant 3.750000e-01 : f32
      %11 = vector.broadcast %cst_5 : f32 to vector<19x8xf32>
      %12 = arith.mulf %11, %10 : vector<19x8xf32>
      %13 = arith.addf %6, %12 : vector<19x8xf32>
      %c2_i32_6 = arith.constant 2 : i32
      %14 = arith.addi %1, %c2_i32_6 : i32
      %15 = arith.index_cast %14 : i32 to index
      %c0_7 = arith.constant 0 : index
      %c0_8 = arith.constant 0 : index
      %16 = vector.load %arg1[%15, %c0_7, %c0_8] : memref<19x19x8xf32, #tpu.memory_space<vmem>>, vector<1x19x8xf32>
      %17 = vector.shape_cast %16 : vector<1x19x8xf32> to vector<19x8xf32>
      %cst_9 = arith.constant 3.750000e-01 : f32
      %18 = vector.broadcast %cst_9 : f32 to vector<19x8xf32>
      %19 = arith.mulf %18, %17 : vector<19x8xf32>
      %20 = arith.addf %13, %19 : vector<19x8xf32>
      %c3_i32 = arith.constant 3 : i32
      %21 = arith.addi %1, %c3_i32 : i32
      %22 = arith.index_cast %21 : i32 to index
      %c0_10 = arith.constant 0 : index
      %c0_11 = arith.constant 0 : index
      %23 = vector.load %arg1[%22, %c0_10, %c0_11] : memref<19x19x8xf32, #tpu.memory_space<vmem>>, vector<1x19x8xf32>
      %24 = vector.shape_cast %23 : vector<1x19x8xf32> to vector<19x8xf32>
      %cst_12 = arith.constant 1.250000e-01 : f32
      %25 = vector.broadcast %cst_12 : f32 to vector<19x8xf32>
      %26 = arith.mulf %25, %24 : vector<19x8xf32>
      %27 = arith.addf %20, %26 : vector<19x8xf32>
      %c0_13 = arith.constant 0 : index
      %c0_14 = arith.constant 0 : index
      %28 = vector.load %arg3[%c0_13, %c0_14] : memref<19x8xf32, #tpu.memory_space<vmem>>, vector<19x8xf32>
      tpu.vector_store %arg3[%c0_13, %c0_14], %27 {strides = array<i32>} : memref<19x8xf32, #tpu.memory_space<vmem>>, vector<19x8xf32>,
      %c0_15 = arith.constant 0 : index
      %c0_16 = arith.constant 0 : index
      %29 = tpu.strided_load %arg3[%c0_15, %c0_16] {strides = array<i32: 2, 1>} : memref<19x8xf32, #tpu.memory_space<vmem>>, vector<8x8xf32>
      %cst_17 = arith.constant 1.250000e-01 : f32
      %30 = vector.broadcast %cst_17 : f32 to vector<8x8xf32>
      %31 = arith.mulf %30, %29 : vector<8x8xf32>
      %c1 = arith.constant 1 : index
      %c0_18 = arith.constant 0 : index
      %32 = tpu.strided_load %arg3[%c1, %c0_18] {strides = array<i32: 2, 1>} : memref<19x8xf32, #tpu.memory_space<vmem>>, vector<8x8xf32>
      %cst_19 = arith.constant 3.750000e-01 : f32
      %33 = vector.broadcast %cst_19 : f32 to vector<8x8xf32>
      %34 = arith.mulf %33, %32 : vector<8x8xf32>
      %35 = arith.addf %31, %34 : vector<8x8xf32>
      %c2 = arith.constant 2 : index
      %c0_20 = arith.constant 0 : index
      %36 = tpu.strided_load %arg3[%c2, %c0_20] {strides = array<i32: 2, 1>} : memref<19x8xf32, #tpu.memory_space<vmem>>, vector<8x8xf32>
      %cst_21 = arith.constant 3.750000e-01 : f32
      %37 = vector.broadcast %cst_21 : f32 to vector<8x8xf32>
      %38 = arith.mulf %37, %36 : vector<8x8xf32>
      %39 = arith.addf %35, %38 : vector<8x8xf32>
      %c3 = arith.constant 3 : index
      %c0_22 = arith.constant 0 : index
      %40 = tpu.strided_load %arg3[%c3, %c0_22] {strides = array<i32: 2, 1>} : memref<19x8xf32, #tpu.memory_space<vmem>>, vector<8x8xf32>
      %cst_23 = arith.constant 1.250000e-01 : f32
      %41 = vector.broadcast %cst_23 : f32 to vector<8x8xf32>
      %42 = arith.mulf %41, %40 : vector<8x8xf32>
      %43 = arith.addf %39, %42 : vector<8x8xf32>
      %44 = arith.index_cast %arg4 : i32 to index
      %c0_24 = arith.constant 0 : index
      %c0_25 = arith.constant 0 : index
      %45 = vector.load %arg2[%44, %c0_24, %c0_25] : memref<8x8x8xf32, #tpu.memory_space<vmem>>, vector<1x8x8xf32>
      %46 = vector.shape_cast %45 : vector<1x8x8xf32> to vector<8x8xf32>
      %47 = vector.shape_cast %43 : vector<8x8xf32> to vector<1x8x8xf32>
      tpu.vector_store %arg2[%44, %c0_24, %c0_25], %47 {strides = array<i32>} : memref<8x8x8xf32, #tpu.memory_space<vmem>>, vector<1x8x8xf32>,
    }
    %c8_i32_0 = arith.constant 8 : i32
    return
  }
  func.func @transform_0(%arg0: i32) -> (i32, i32, i32) {
    %c0_i32 = arith.constant 0 : i32
    %c0_i32_0 = arith.constant 0 : i32
    %c0_i32_1 = arith.constant 0 : i32
    return %c0_i32, %c0_i32_0, %arg0 : i32, i32, i32
  }
  func.func @transform_1(%arg0: i32) -> (i32, i32, i32) {
    %c0_i32 = arith.constant 0 : i32
    %c0_i32_0 = arith.constant 0 : i32
    %c0_i32_1 = arith.constant 0 : i32
    return %c0_i32, %c0_i32_0, %arg0 : i32, i32, i32
  }
}

</mosaic_0001>

<bundles_post_ra>
// kernel: tpu_custom_call.1
= control target key start
LH: loop header
LB: loop body
LE: loop exit
PB: predicated region body
PF: predicated region fallthrough
CT: control target
= control target key end

     0   :  { %6 = vsyncpa [#allocation4], 0  ;;  %s197_s6 = smov 0   ;;  %s216_s0 = inlined_call_operand.vmem [shape: f32[19,19,8], index: 0, kind: input, shape index: {}]   ;;  %s217_s1 = inlined_call_operand.hbm [shape: f32[8,8,8], index: 1, kind: output, shape index: {}]  }
   0x1 LB: > { %s122_s7 = smul.u32 48, %s182_s6  ;;  %vm60_vm0 = vcmask 64512   ;;  %vm63_vm1 = vcmask 59392   ;;  %s138_s11 = sshll.u32 %s182_s6, 3  ;;  %s182_s6 = sphi %s197_s6, %s14_s6  }
   0x2   : > { %s80_s12 = scalar_lea.vmem [#allocation3], %s138_s11  ;;  %s14_s6 = sadd.s32 1, %s182_s6  }
   0x3   : > { %s17_s10 = scalar_lea.vmem %s216_s0, %s122_s7  ;;  %p11_p0 = scmp.ge.s32.totalorder %s14_s6, 8  }
   0x4   : > { %v18_v0 = vld [vmem:[%s17_s10] sm:$0xff]  ;;  %v125_v1 = vld [vmem:[%s17_s10 + $0x18] sm:$0xff]  ;;  %v130_v2 = vld [vmem:[%s17_s10 + $0x30] sm:$0xff]  ;;  %s88_s15 = sshll.u32 (%p11_p0), %s217_s1, 4  ;;  %s184_s16 = smov (%p11_p0), [#allocation3]   ;;  %s89_s15 = int_to_ptr.hbm [resolvable:$true] %s88_s15 }
   0x5   : > { %v21_v3 = vmul.f32 0.125, %v18_v0  ;;  %v30_v4 = vmul.f32 0.375, %v125_v1  ;;  %v42_v5 = vmul.f32 0.375, %v130_v2  ;;  %v135_v6 = vld [vmem:[%s17_s10 + $0x48] sm:$0xff]  ;;  %v126_v8 = vld [vmem:[%s17_s10 + $0x20] sm:$0xff]  ;;  %v131_v12 = vld [vmem:[%s17_s10 + $0x38] sm:$0xff] }
   0x6   : > { %v19_v7 = vld [vmem:[%s17_s10 + $0x8] sm:$0xff]  ;;  %v54_v9 = vmul.f32 0.125, %v135_v6  ;;  %v31_v11 = vmul.f32 0.375, %v126_v8  ;;  %v136_v13 = vld [vmem:[%s17_s10 + $0x50] sm:$0xff]  ;;  %v43_v15 = vmul.f32 0.375, %v131_v12  ;;  %s86_s17 = sshll.u32 (%p11_p0), %s184_s16, 4  ;;  %s87_s17 = int_to_ptr.vmem [resolvable:$true] %s86_s17 }
   0x7   : > { %v22_v10 = vmul.f32 0.125, %v19_v7  ;;  %v33_v14 = vadd.f32 %v30_v4, %v21_v3  ;;  %v55_v16 = vmul.f32 0.125, %v136_v13  ;;  %v20_v17 = vld [vmem:[%s17_s10 + $0x10] sm:$0x7]  ;;  %v127_v18 = vld [vmem:[%s17_s10 + $0x28] sm:$0x7] }
   0x8   : > { %v23_v20 = vmul.f32 0.125, %v20_v17  ;;  %v32_v21 = vmul.f32 0.375, %v127_v18  ;;  %v132_v22 = vld [vmem:[%s17_s10 + $0x40] sm:$0x7]  ;;  %v137_v23 = vld [vmem:[%s17_s10 + $0x58] sm:$0x7] }
   0x9   : > { %v34_v19 = vadd.f32 %v31_v11, %v22_v10  ;;  %v45_v24 = vadd.f32 %v42_v5, %v33_v14  ;;  %v44_v25 = vmul.f32 0.375, %v132_v22  ;;  %v56_v28 = vmul.f32 0.125, %v137_v23  ;;  %s185_s18 = smov (%p11_p0), 128   ;;  %s186_s19 = smov (%p11_p0), 8  }
   0xa   : > { %v35_v27 = vadd.f32 %v32_v21, %v23_v20 }
   0xb   : > { %v46_v26 = vadd.f32 %v43_v15, %v34_v19  ;;  %v57_v29 = vadd.f32 %v54_v9, %v45_v24 }
   0xc   : > { %v47_v31 = vadd.f32 %v44_v25, %v35_v27 }
   0xd   : > { %v58_v30 = vadd.f32 %v55_v16, %v46_v26  ;;  %61 = vst.msk [vmem:[#allocation2] sm:$0xff] %vm60_vm0, %v57_v29 }
   0xe   : > { %v59_v32 = vadd.f32 %v56_v28, %v47_v31 }
   0xf   : > { %62 = vst.msk [vmem:[#allocation2 + $0x8] sm:$0xff] %vm60_vm0, %v58_v30 }
  0x10   : > { %64 = vst.msk [vmem:[#allocation2 + $0x10] sm:$0x7] %vm63_vm1, %v59_v32 }
  0x16   : > { %v65_v33 = vld [vmem:[#allocation2] ss:$2 sm:$0xff]  ;;  %v68_v34 = vld [vmem:[#allocation2 + $0x1] ss:$2 sm:$0xff] }
  0x17   : > { %v66_v35 = vmul.f32 0.125, %v65_v33  ;;  %v69_v36 = vmul.f32 0.375, %v68_v34  ;;  %v72_v37 = vld [vmem:[#allocation2 + $0x2] ss:$2 sm:$0xff]  ;;  %v76_v38 = vld [vmem:[#allocation2 + $0x3] ss:$2 sm:$0xff] }
  0x18   : > { %v73_v40 = vmul.f32 0.375, %v72_v37  ;;  %v77_v42 = vmul.f32 0.125, %v76_v38 }
  0x19   : > { %v70_v39 = vadd.f32 %v69_v36, %v66_v35 }
  0x1b   : > { %v74_v41 = vadd.f32 %v73_v40, %v70_v39  ;;  %13 = sbr.rel (!%p11_p0) target bundleno = 1 (0x1), region = 39 }
  0x1d   : > { %v78_v43 = vadd.f32 %v77_v42, %v74_v41 }
  0x1f   : > { %81 = vst.msk [vmem:[%s80_s12] sm:$0xff] %vm60_vm0, %v78_v43 }
  0x20   :  { %94 = dma.vmem_to_hbm [thread:$0]  %s87_s17, 1024, %s89_s15, [#allocation4], %s185_s18, %s185_s18, %s186_s19  }
  0x21   :  { %178 = dma.done.wait [#allocation4], 1024  }
  0x22   :  { %179 = vsyncadd [#allocation4], 4294966272 }
  0x23   :  { %99 = vsyncpa [#allocation4], 1 }

</bundles_post_ra>
